<compile_context>
chip_gen: v6e
topology: v6e:2x2x1
jax: 0.10.0
libtpu: 0.0.40
codegen_flags: <defaults>
</compile_context>

<pallas_src>
import functools

import jax
import jax.numpy as jnp
from jax.experimental import pallas as pl
from jax.experimental.pallas import tpu as pltpu

LEAKY_SLOPE = 0.01  # torch.nn.functional.leaky_relu default


# --------------------------------------------------------------------------
# Fused kernel: all conv layers (+ leaky_relu) + readout in one invocation.
#   x_ref   : (B*N, Fin)      flat node features
#   a_ref   : (B, N, N)       precomputed propagation operator per graph
#   conv refs (per layer) : w_i (Fin_i, hidden), b_i (1, hidden)
#   wro_ref : (N, hidden, hidden)  readout_lin weight (reshaped W^T)
#   bro_ref : (1, hidden)
#   wl_ref  : (1, hidden)     final lin weight (transposed)
#   bl_ref  : (1, 1)
#   o_ref   : (B, 1)
# --------------------------------------------------------------------------
def _fused_kernel(num_layers, n_graphs, n_nodes, x_ref, a_ref, *rest):
    *param_refs, o_ref = rest
    conv_refs = param_refs[:2 * num_layers]
    wro_ref, bro_ref, wl_ref, bl_ref = param_refs[2 * num_layers:]

    x = x_ref[...]                      # (B*N, Fin) f32
    a = a_ref[...]                      # (B, N, N)  f32 (loaded once, reused)

    # ---- stacked hypergraph conv layers:  X <- leaky_relu(A (X W) + b) ----
    for i in range(num_layers):
        w = conv_refs[2 * i][...]       # (Fin_i, hidden)
        b = conv_refs[2 * i + 1][...]   # (1, hidden)
        hid = w.shape[1]
        # shared-weight matmul over the whole batch (MXU M-dim = B*N)
        xw = jnp.dot(x, w, preferred_element_type=jnp.float32)   # (B*N, hid)
        xw3 = xw.reshape(n_graphs, n_nodes, hid)
        # per-graph propagation with the precomputed operator A
        prop = jnp.einsum('bij,bjh->bih', a, xw3,
                          preferred_element_type=jnp.float32)    # (B, N, hid)
        z = prop.reshape(n_graphs * n_nodes, hid) + b
        x = jnp.where(z > 0, z, LEAKY_SLOPE * z)                  # fused leaky_relu

    hid = x.shape[1]
    x3 = x.reshape(n_graphs, n_nodes, hid)

    # ---- readout: per-graph flatten -> Linear(N*hid, hid) -----------------
    # Implemented as sum_n x[:, n, :] @ Wro[n] so no lane-merging reshape is
    # needed and the MXU M-dim stays the full batch.
    acc = jnp.zeros((n_graphs, hid), jnp.float32)
    for nidx in range(n_nodes):
        acc = acc + jnp.dot(x3[:, nidx, :], wro_ref[nidx],
                            preferred_element_type=jnp.float32)
    h = acc + bro_ref[...]
    h = jnp.where(h > 0, h, LEAKY_SLOPE * h)                      # leaky_relu

    # ---- final Linear(hid, 1) as a VPU reduction (no 1-wide MXU matmul) ----
    out = jnp.sum(h * wl_ref[...], axis=-1, keepdims=True) + bl_ref[...]
    o_ref[...] = out.astype(o_ref.dtype)


def fused_forward(x2d, A, conv_ws, conv_bs, wro3, bro, wl_row, bl):
    BN, Fin = x2d.shape
    B, N, _ = A.shape
    num_layers = len(conv_ws)
    assert len(conv_bs) == num_layers

    kernel = functools.partial(_fused_kernel, num_layers, B, N)

    in_arrays = [x2d, A]
    in_specs = [
        pl.BlockSpec((BN, Fin), lambda i: (0, 0)),
        pl.BlockSpec((B, N, N), lambda i: (0, 0, 0)),
    ]
    for w, b in zip(conv_ws, conv_bs):
        in_arrays += [w, b]
        in_specs += [
            pl.BlockSpec(w.shape, lambda i: (0, 0)),
            pl.BlockSpec(b.shape, lambda i: (0, 0)),
        ]
    in_arrays += [wro3, bro, wl_row, bl]
    in_specs += [
        pl.BlockSpec(wro3.shape, lambda i: (0, 0, 0)),
        pl.BlockSpec(bro.shape, lambda i: (0, 0)),
        pl.BlockSpec(wl_row.shape, lambda i: (0, 0)),
        pl.BlockSpec(bl.shape, lambda i: (0, 0)),
    ]

    # TODO(synk): at realistic node_sz / batch, add a "parallel" grid axis over
    # batch chunks (2 TCs on v7x), tile A's edge axis against v7x's 64 MiB
    # VMEM, and use bf16 matmul operands with f32 accumulation on v6e/v7x.
    return pl.pallas_call(
        kernel,
        out_shape=jax.ShapeDtypeStruct((B, 1), jnp.float32),
        grid_spec=pltpu.PrefetchScalarGridSpec(
            num_scalar_prefetch=0,
            grid=(1,),
            in_specs=in_specs,
            out_specs=pl.BlockSpec((B, 1), lambda i: (0, 0)),
        ),
        compiler_params=pltpu.CompilerParams(
            dimension_semantics=("arbitrary",)),
    )(*in_arrays)


# --------------------------------------------------------------------------
# Full model (setup glue in plain JAX, hot path in one Pallas kernel)
# --------------------------------------------------------------------------
def hypergraph_gcn_v2_forward(x_nodes, hyperedge_index, batch, params,
                              node_sz, hidden_size, num_layers):
    """x_nodes: [N_total, feat] (PyG-style flat node features)."""
    N_total, feat = x_nodes.shape
    B = N_total // node_sz
    num_edges = node_sz
    del batch  # batch structure is implied by node_sz (fixed-size graphs)

    # Dense per-graph incidence H[g, i, e] from COO hyperedge_index (glue).
    # TODO(synk): for large node_sz keep H sparse (scalar-prefetched COO)
    # instead of this dense O(B*N^2) scatter.
    node_idx = hyperedge_index[0]
    edge_idx = hyperedge_index[1]
    g_of_entry = node_idx // node_sz
    local_node = node_idx % node_sz
    local_edge = edge_idx % num_edges
    H = jnp.zeros((B, node_sz, num_edges), jnp.float32)
    H = H.at[g_of_entry, local_node, local_edge].set(1.0)

    # Degree normalizations and the layer-invariant propagation operator
    #   A = D^-1 H B^-1 H^T   (computed ONCE, reused by every conv layer).
    deg_n = H.sum(axis=2, keepdims=True)               # (B, N, 1)
    deg_e = H.sum(axis=1, keepdims=True)               # (B, 1, M)
    dinv = jnp.where(deg_n > 0, 1.0 / deg_n, 0.0)
    binv = jnp.where(deg_e > 0, 1.0 / deg_e, 0.0)
    A = jnp.einsum('bnm,bkm->bnk', dinv * H, binv * H)  # (B, N, N)

    x2d = x_nodes.astype(jnp.float32)                   # (B*N, feat)

    conv_ws = [params["conv_w"][i] for i in range(num_layers)]
    conv_bs = [params["conv_b"][i] for i in range(num_layers)]
    wro3 = params["ro_w"].reshape(node_sz, hidden_size, hidden_size)
    wl_row = params["lin_w"].T                          # (1, hidden)

    # Default readout path ('readout' not in {set_transformer, janossy}).
    # TODO(synk): set_transformer / janossy readout branches not implemented.
    out = fused_forward(x2d, A, conv_ws, conv_bs, wro3,
                        params["ro_b"], wl_row, params["lin_b"])
    return out                                          # [B, 1]


# --------------------------------------------------------------------------
# Main
# --------------------------------------------------------------------------
if __name__ == "__main__":
    # Small config consistent with the module.
    B = 2                 # graphs in batch
    node_sz = 8           # cfg.dataset.node_sz (= num_edges)
    feat = 16             # cfg.dataset.node_feature_sz
    hidden = 32           # cfg.model.hidden_size
    num_layers = 2        # cfg.model.num_layers
    num_edges = node_sz
    N_total = B * node_sz

    key = jax.random.PRNGKey(0)
    keys = jax.random.split(key, 8)

    # Node features (PyG-style flat) and batch vector.
    x_nodes = jax.random.normal(keys[0], (N_total, feat), jnp.float32)
    batch = jnp.repeat(jnp.arange(B, dtype=jnp.int32), node_sz)

    # Deterministic COO hyperedge_index: per graph, hyperedge e contains
    # nodes {e, (e+1)%n, (e+3)%n}.
    import numpy as np
    ni, ei = [], []
    for g in range(B):
        for e in range(num_edges):
            for off in (0, 1, 3):
                ni.append(g * node_sz + (e + off) % node_sz)
                ei.append(g * num_edges + e)
    hyperedge_index = jnp.asarray(np.stack([ni, ei]), jnp.int32)  # [2, nnz]

    # Deterministic parameters.
    def init(k, shape, scale=0.1):
        return scale * jax.random.normal(k, shape, jnp.float32)

    conv_w, conv_b = [], []
    for i in range(num_layers):
        fin = feat if i == 0 else hidden
        conv_w.append(init(jax.random.fold_in(keys[1], i), (fin, hidden)))
        conv_b.append(init(jax.random.fold_in(keys[2], i), (1, hidden)))
    params = dict(
        conv_w=conv_w,
        conv_b=conv_b,
        ro_w=init(keys[3], (node_sz * hidden, hidden)),   # readout_lin (W^T)
        ro_b=init(keys[4], (1, hidden)),
        lin_w=init(keys[5], (hidden, 1)),                 # lin (W^T)
        lin_b=init(keys[6], (1, 1)),
    )

    fwd = jax.jit(functools.partial(
        hypergraph_gcn_v2_forward,
        node_sz=node_sz, hidden_size=hidden, num_layers=num_layers))

    out = fwd(x_nodes, hyperedge_index, batch, params)
    out = jax.block_until_ready(out)
    assert out.shape == (B, 1), out.shape
    print("KERNEL_OK")
</pallas_src>

<mosaic_0001>
module attributes {stable_mosaic.version = 11 : i64} {
  func.func @_fused_kernel(%arg0: i32, %arg1: memref<16x16xf32, #tpu.memory_space<vmem>>, %arg2: memref<2x8x8xf32, #tpu.memory_space<vmem>>, %arg3: memref<16x32xf32, #tpu.memory_space<vmem>>, %arg4: memref<1x32xf32, #tpu.memory_space<vmem>>, %arg5: memref<32x32xf32, #tpu.memory_space<vmem>>, %arg6: memref<1x32xf32, #tpu.memory_space<vmem>>, %arg7: memref<8x32x32xf32, #tpu.memory_space<vmem>>, %arg8: memref<1x32xf32, #tpu.memory_space<vmem>>, %arg9: memref<1x32xf32, #tpu.memory_space<vmem>>, %arg10: memref<1x1xf32, #tpu.memory_space<vmem>>, %arg11: memref<2x1xf32, #tpu.memory_space<vmem>>) attributes {dimension_semantics = [#tpu.dimension_semantics<arbitrary>], iteration_bounds = array<i64: 1>, scalar_prefetch = 0 : i64, scratch_operands = 0 : i64, tpu.core_type = #tpu.core_type<tc>, window_params = [{pipeline_mode = #tpu.pipeline_mode<synchronous>, transform_indices = @transform_0, window_bounds = array<i64: 16, 16>}, {pipeline_mode = #tpu.pipeline_mode<synchronous>, transform_indices = @transform_1, window_bounds = array<i64: 2, 8, 8>}, {pipeline_mode = #tpu.pipeline_mode<synchronous>, transform_indices = @transform_2, window_bounds = array<i64: 16, 32>}, {pipeline_mode = #tpu.pipeline_mode<synchronous>, transform_indices = @transform_3, window_bounds = array<i64: 1, 32>}, {pipeline_mode = #tpu.pipeline_mode<synchronous>, transform_indices = @transform_4, window_bounds = array<i64: 32, 32>}, {pipeline_mode = #tpu.pipeline_mode<synchronous>, transform_indices = @transform_5, window_bounds = array<i64: 1, 32>}, {pipeline_mode = #tpu.pipeline_mode<synchronous>, transform_indices = @transform_6, window_bounds = array<i64: 8, 32, 32>}, {pipeline_mode = #tpu.pipeline_mode<synchronous>, transform_indices = @transform_7, window_bounds = array<i64: 1, 32>}, {pipeline_mode = #tpu.pipeline_mode<synchronous>, transform_indices = @transform_8, window_bounds = array<i64: 1, 32>}, {pipeline_mode = #tpu.pipeline_mode<synchronous>, transform_indices = @transform_9, window_bounds = array<i64: 1, 1>}, {pipeline_mode = #tpu.pipeline_mode<synchronous>, transform_indices = @transform_10, window_bounds = array<i64: 2, 1>}]} {
    %c0 = arith.constant 0 : index
    %c0_0 = arith.constant 0 : index
    %0 = vector.load %arg1[%c0, %c0_0] : memref<16x16xf32, #tpu.memory_space<vmem>>, vector<16x16xf32>
    %c0_1 = arith.constant 0 : index
    %c0_2 = arith.constant 0 : index
    %c0_3 = arith.constant 0 : index
    %1 = vector.load %arg2[%c0_1, %c0_2, %c0_3] : memref<2x8x8xf32, #tpu.memory_space<vmem>>, vector<2x8x8xf32>
    %c0_4 = arith.constant 0 : index
    %c0_5 = arith.constant 0 : index
    %2 = vector.load %arg3[%c0_4, %c0_5] : memref<16x32xf32, #tpu.memory_space<vmem>>, vector<16x32xf32>
    %c0_6 = arith.constant 0 : index
    %c0_7 = arith.constant 0 : index
    %3 = vector.load %arg4[%c0_6, %c0_7] : memref<1x32xf32, #tpu.memory_space<vmem>>, vector<1x32xf32>
    %cst = arith.constant dense<0.000000e+00> : vector<16x32xf32>
    %4 = tpu.matmul %0, %2, %cst {dimension_numbers = #tpu.dot_dimension_numbers<[1], [0], [0], [1], [0, 0, 1, 1], [], []>} : vector<16x16xf32>, vector<16x32xf32>, vector<16x32xf32> -> vector<16x32xf32>
    %5 = vector.shape_cast %4 : vector<16x32xf32> to vector<2x8x32xf32>
    "tpu.trace_start"() <{level = 10 : i32, message = "bij,bjh->bih"}> : () -> ()
    %cst_8 = arith.constant dense<0.000000e+00> : vector<2x8x32xf32>
    %6 = tpu.matmul %1, %5, %cst_8 {dimension_numbers = #tpu.dot_dimension_numbers<[2], [1], [1], [2], [0, 0, 0, 1, 1, 2], [0], [0]>} : vector<2x8x8xf32>, vector<2x8x32xf32>, vector<2x8x32xf32> -> vector<2x8x32xf32>
    "tpu.trace_stop"() : () -> ()
    %7 = vector.shape_cast %6 : vector<2x8x32xf32> to vector<16x32xf32>
    %8 = vector.broadcast %3 : vector<1x32xf32> to vector<16x32xf32>
    %9 = arith.addf %7, %8 : vector<16x32xf32>
    %cst_9 = arith.constant 0.000000e+00 : f32
    %10 = vector.broadcast %cst_9 : f32 to vector<16x32xf32>
    %11 = arith.cmpf ogt, %9, %10 : vector<16x32xf32>
    %cst_10 = arith.constant 0.00999999977 : f32
    %12 = vector.broadcast %cst_10 : f32 to vector<16x32xf32>
    %13 = arith.mulf %12, %9 : vector<16x32xf32>
    %14 = arith.select %11, %9, %13 : vector<16x32xi1>, vector<16x32xf32>
    %c0_11 = arith.constant 0 : index
    %c0_12 = arith.constant 0 : index
    %15 = vector.load %arg5[%c0_11, %c0_12] : memref<32x32xf32, #tpu.memory_space<vmem>>, vector<32x32xf32>
    %c0_13 = arith.constant 0 : index
    %c0_14 = arith.constant 0 : index
    %16 = vector.load %arg6[%c0_13, %c0_14] : memref<1x32xf32, #tpu.memory_space<vmem>>, vector<1x32xf32>
    %cst_15 = arith.constant dense<0.000000e+00> : vector<16x32xf32>
    %17 = tpu.matmul %14, %15, %cst_15 {dimension_numbers = #tpu.dot_dimension_numbers<[1], [0], [0], [1], [0, 0, 1, 1], [], []>} : vector<16x32xf32>, vector<32x32xf32>, vector<16x32xf32> -> vector<16x32xf32>
    %18 = vector.shape_cast %17 : vector<16x32xf32> to vector<2x8x32xf32>
    "tpu.trace_start"() <{level = 10 : i32, message = "bij,bjh->bih"}> : () -> ()
    %cst_16 = arith.constant dense<0.000000e+00> : vector<2x8x32xf32>
    %19 = tpu.matmul %1, %18, %cst_16 {dimension_numbers = #tpu.dot_dimension_numbers<[2], [1], [1], [2], [0, 0, 0, 1, 1, 2], [0], [0]>} : vector<2x8x8xf32>, vector<2x8x32xf32>, vector<2x8x32xf32> -> vector<2x8x32xf32>
    "tpu.trace_stop"() : () -> ()
    %20 = vector.shape_cast %19 : vector<2x8x32xf32> to vector<16x32xf32>
    %21 = vector.broadcast %16 : vector<1x32xf32> to vector<16x32xf32>
    %22 = arith.addf %20, %21 : vector<16x32xf32>
    %cst_17 = arith.constant 0.000000e+00 : f32
    %23 = vector.broadcast %cst_17 : f32 to vector<16x32xf32>
    %24 = arith.cmpf ogt, %22, %23 : vector<16x32xf32>
    %cst_18 = arith.constant 0.00999999977 : f32
    %25 = vector.broadcast %cst_18 : f32 to vector<16x32xf32>
    %26 = arith.mulf %25, %22 : vector<16x32xf32>
    %27 = arith.select %24, %22, %26 : vector<16x32xi1>, vector<16x32xf32>
    %28 = vector.shape_cast %27 : vector<16x32xf32> to vector<2x8x32xf32>
    %cst_19 = arith.constant 0.000000e+00 : f32
    %29 = vector.broadcast %cst_19 : f32 to vector<2x32xf32>
    %30 = vector.extract_strided_slice %28 {offsets = [0, 0, 0], sizes = [2, 1, 32], strides = [1, 1, 1]} : vector<2x8x32xf32> to vector<2x1x32xf32>
    %31 = vector.shape_cast %30 : vector<2x1x32xf32> to vector<2x32xf32>
    %c0_20 = arith.constant 0 : index
    %c0_21 = arith.constant 0 : index
    %c0_22 = arith.constant 0 : index
    %32 = vector.load %arg7[%c0_20, %c0_21, %c0_22] : memref<8x32x32xf32, #tpu.memory_space<vmem>>, vector<1x32x32xf32>
    %33 = vector.shape_cast %32 : vector<1x32x32xf32> to vector<32x32xf32>
    %cst_23 = arith.constant dense<0.000000e+00> : vector<2x32xf32>
    %34 = tpu.matmul %31, %33, %cst_23 {dimension_numbers = #tpu.dot_dimension_numbers<[1], [0], [0], [1], [0, 0, 1, 1], [], []>} : vector<2x32xf32>, vector<32x32xf32>, vector<2x32xf32> -> vector<2x32xf32>
    %35 = arith.addf %29, %34 : vector<2x32xf32>
    %36 = vector.extract_strided_slice %28 {offsets = [0, 1, 0], sizes = [2, 1, 32], strides = [1, 1, 1]} : vector<2x8x32xf32> to vector<2x1x32xf32>
    %37 = vector.shape_cast %36 : vector<2x1x32xf32> to vector<2x32xf32>
    %c1 = arith.constant 1 : index
    %c0_24 = arith.constant 0 : index
    %c0_25 = arith.constant 0 : index
    %38 = vector.load %arg7[%c1, %c0_24, %c0_25] : memref<8x32x32xf32, #tpu.memory_space<vmem>>, vector<1x32x32xf32>
    %39 = vector.shape_cast %38 : vector<1x32x32xf32> to vector<32x32xf32>
    %cst_26 = arith.constant dense<0.000000e+00> : vector<2x32xf32>
    %40 = tpu.matmul %37, %39, %cst_26 {dimension_numbers = #tpu.dot_dimension_numbers<[1], [0], [0], [1], [0, 0, 1, 1], [], []>} : vector<2x32xf32>, vector<32x32xf32>, vector<2x32xf32> -> vector<2x32xf32>
    %41 = arith.addf %35, %40 : vector<2x32xf32>
    %42 = vector.extract_strided_slice %28 {offsets = [0, 2, 0], sizes = [2, 1, 32], strides = [1, 1, 1]} : vector<2x8x32xf32> to vector<2x1x32xf32>
    %43 = vector.shape_cast %42 : vector<2x1x32xf32> to vector<2x32xf32>
    %c2 = arith.constant 2 : index
    %c0_27 = arith.constant 0 : index
    %c0_28 = arith.constant 0 : index
    %44 = vector.load %arg7[%c2, %c0_27, %c0_28] : memref<8x32x32xf32, #tpu.memory_space<vmem>>, vector<1x32x32xf32>
    %45 = vector.shape_cast %44 : vector<1x32x32xf32> to vector<32x32xf32>
    %cst_29 = arith.constant dense<0.000000e+00> : vector<2x32xf32>
    %46 = tpu.matmul %43, %45, %cst_29 {dimension_numbers = #tpu.dot_dimension_numbers<[1], [0], [0], [1], [0, 0, 1, 1], [], []>} : vector<2x32xf32>, vector<32x32xf32>, vector<2x32xf32> -> vector<2x32xf32>
    %47 = arith.addf %41, %46 : vector<2x32xf32>
    %48 = vector.extract_strided_slice %28 {offsets = [0, 3, 0], sizes = [2, 1, 32], strides = [1, 1, 1]} : vector<2x8x32xf32> to vector<2x1x32xf32>
    %49 = vector.shape_cast %48 : vector<2x1x32xf32> to vector<2x32xf32>
    %c3 = arith.constant 3 : index
    %c0_30 = arith.constant 0 : index
    %c0_31 = arith.constant 0 : index
    %50 = vector.load %arg7[%c3, %c0_30, %c0_31] : memref<8x32x32xf32, #tpu.memory_space<vmem>>, vector<1x32x32xf32>
    %51 = vector.shape_cast %50 : vector<1x32x32xf32> to vector<32x32xf32>
    %cst_32 = arith.constant dense<0.000000e+00> : vector<2x32xf32>
    %52 = tpu.matmul %49, %51, %cst_32 {dimension_numbers = #tpu.dot_dimension_numbers<[1], [0], [0], [1], [0, 0, 1, 1], [], []>} : vector<2x32xf32>, vector<32x32xf32>, vector<2x32xf32> -> vector<2x32xf32>
    %53 = arith.addf %47, %52 : vector<2x32xf32>
    %54 = vector.extract_strided_slice %28 {offsets = [0, 4, 0], sizes = [2, 1, 32], strides = [1, 1, 1]} : vector<2x8x32xf32> to vector<2x1x32xf32>
    %55 = vector.shape_cast %54 : vector<2x1x32xf32> to vector<2x32xf32>
    %c4 = arith.constant 4 : index
    %c0_33 = arith.constant 0 : index
    %c0_34 = arith.constant 0 : index
    %56 = vector.load %arg7[%c4, %c0_33, %c0_34] : memref<8x32x32xf32, #tpu.memory_space<vmem>>, vector<1x32x32xf32>
    %57 = vector.shape_cast %56 : vector<1x32x32xf32> to vector<32x32xf32>
    %cst_35 = arith.constant dense<0.000000e+00> : vector<2x32xf32>
    %58 = tpu.matmul %55, %57, %cst_35 {dimension_numbers = #tpu.dot_dimension_numbers<[1], [0], [0], [1], [0, 0, 1, 1], [], []>} : vector<2x32xf32>, vector<32x32xf32>, vector<2x32xf32> -> vector<2x32xf32>
    %59 = arith.addf %53, %58 : vector<2x32xf32>
    %60 = vector.extract_strided_slice %28 {offsets = [0, 5, 0], sizes = [2, 1, 32], strides = [1, 1, 1]} : vector<2x8x32xf32> to vector<2x1x32xf32>
    %61 = vector.shape_cast %60 : vector<2x1x32xf32> to vector<2x32xf32>
    %c5 = arith.constant 5 : index
    %c0_36 = arith.constant 0 : index
    %c0_37 = arith.constant 0 : index
    %62 = vector.load %arg7[%c5, %c0_36, %c0_37] : memref<8x32x32xf32, #tpu.memory_space<vmem>>, vector<1x32x32xf32>
    %63 = vector.shape_cast %62 : vector<1x32x32xf32> to vector<32x32xf32>
    %cst_38 = arith.constant dense<0.000000e+00> : vector<2x32xf32>
    %64 = tpu.matmul %61, %63, %cst_38 {dimension_numbers = #tpu.dot_dimension_numbers<[1], [0], [0], [1], [0, 0, 1, 1], [], []>} : vector<2x32xf32>, vector<32x32xf32>, vector<2x32xf32> -> vector<2x32xf32>
    %65 = arith.addf %59, %64 : vector<2x32xf32>
    %66 = vector.extract_strided_slice %28 {offsets = [0, 6, 0], sizes = [2, 1, 32], strides = [1, 1, 1]} : vector<2x8x32xf32> to vector<2x1x32xf32>
    %67 = vector.shape_cast %66 : vector<2x1x32xf32> to vector<2x32xf32>
    %c6 = arith.constant 6 : index
    %c0_39 = arith.constant 0 : index
    %c0_40 = arith.constant 0 : index
    %68 = vector.load %arg7[%c6, %c0_39, %c0_40] : memref<8x32x32xf32, #tpu.memory_space<vmem>>, vector<1x32x32xf32>
    %69 = vector.shape_cast %68 : vector<1x32x32xf32> to vector<32x32xf32>
    %cst_41 = arith.constant dense<0.000000e+00> : vector<2x32xf32>
    %70 = tpu.matmul %67, %69, %cst_41 {dimension_numbers = #tpu.dot_dimension_numbers<[1], [0], [0], [1], [0, 0, 1, 1], [], []>} : vector<2x32xf32>, vector<32x32xf32>, vector<2x32xf32> -> vector<2x32xf32>
    %71 = arith.addf %65, %70 : vector<2x32xf32>
    %72 = vector.extract_strided_slice %28 {offsets = [0, 7, 0], sizes = [2, 1, 32], strides = [1, 1, 1]} : vector<2x8x32xf32> to vector<2x1x32xf32>
    %73 = vector.shape_cast %72 : vector<2x1x32xf32> to vector<2x32xf32>
    %c7 = arith.constant 7 : index
    %c0_42 = arith.constant 0 : index
    %c0_43 = arith.constant 0 : index
    %74 = vector.load %arg7[%c7, %c0_42, %c0_43] : memref<8x32x32xf32, #tpu.memory_space<vmem>>, vector<1x32x32xf32>
    %75 = vector.shape_cast %74 : vector<1x32x32xf32> to vector<32x32xf32>
    %cst_44 = arith.constant dense<0.000000e+00> : vector<2x32xf32>
    %76 = tpu.matmul %73, %75, %cst_44 {dimension_numbers = #tpu.dot_dimension_numbers<[1], [0], [0], [1], [0, 0, 1, 1], [], []>} : vector<2x32xf32>, vector<32x32xf32>, vector<2x32xf32> -> vector<2x32xf32>
    %77 = arith.addf %71, %76 : vector<2x32xf32>
    %c0_45 = arith.constant 0 : index
    %c0_46 = arith.constant 0 : index
    %78 = vector.load %arg8[%c0_45, %c0_46] : memref<1x32xf32, #tpu.memory_space<vmem>>, vector<1x32xf32>
    %79 = vector.broadcast %78 : vector<1x32xf32> to vector<2x32xf32>
    %80 = arith.addf %77, %79 : vector<2x32xf32>
    %cst_47 = arith.constant 0.000000e+00 : f32
    %81 = vector.broadcast %cst_47 : f32 to vector<2x32xf32>
    %82 = arith.cmpf ogt, %80, %81 : vector<2x32xf32>
    %cst_48 = arith.constant 0.00999999977 : f32
    %83 = vector.broadcast %cst_48 : f32 to vector<2x32xf32>
    %84 = arith.mulf %83, %80 : vector<2x32xf32>
    %85 = arith.select %82, %80, %84 : vector<2x32xi1>, vector<2x32xf32>
    %c0_49 = arith.constant 0 : index
    %c0_50 = arith.constant 0 : index
    %86 = vector.load %arg9[%c0_49, %c0_50] : memref<1x32xf32, #tpu.memory_space<vmem>>, vector<1x32xf32>
    %87 = vector.broadcast %86 : vector<1x32xf32> to vector<2x32xf32>
    %88 = arith.mulf %85, %87 : vector<2x32xf32>
    %cst_51 = arith.constant dense<0.000000e+00> : vector<2xf32>
    %89 = vector.multi_reduction <add>, %88, %cst_51 [1] : vector<2x32xf32> to vector<2xf32>
    %90 = vector.shape_cast %89 : vector<2xf32> to vector<2x1xf32>
    %c0_52 = arith.constant 0 : index
    %c0_53 = arith.constant 0 : index
    %91 = vector.load %arg10[%c0_52, %c0_53] : memref<1x1xf32, #tpu.memory_space<vmem>>, vector<1x1xf32>
    %92 = vector.broadcast %91 : vector<1x1xf32> to vector<2x1xf32>
    %93 = arith.addf %90, %92 : vector<2x1xf32>
    %c0_54 = arith.constant 0 : index
    %c0_55 = arith.constant 0 : index
    %94 = vector.load %arg11[%c0_54, %c0_55] : memref<2x1xf32, #tpu.memory_space<vmem>>, vector<2x1xf32>
    tpu.vector_store %arg11[%c0_54, %c0_55], %93 {strides = array<i32>} : memref<2x1xf32, #tpu.memory_space<vmem>>, vector<2x1xf32>,
    return
  }
  func.func @transform_0(%arg0: i32) -> (i32, i32) {
    %c0_i32 = arith.constant 0 : i32
    %c0_i32_0 = arith.constant 0 : i32
    %c0_i32_1 = arith.constant 0 : i32
    return %c0_i32, %c0_i32_0 : i32, i32
  }
  func.func @transform_1(%arg0: i32) -> (i32, i32, i32) {
    %c0_i32 = arith.constant 0 : i32
    %c0_i32_0 = arith.constant 0 : i32
    %c0_i32_1 = arith.constant 0 : i32
    %c0_i32_2 = arith.constant 0 : i32
    return %c0_i32, %c0_i32_0, %c0_i32_1 : i32, i32, i32
  }
  func.func @transform_2(%arg0: i32) -> (i32, i32) {
    %c0_i32 = arith.constant 0 : i32
    %c0_i32_0 = arith.constant 0 : i32
    %c0_i32_1 = arith.constant 0 : i32
    return %c0_i32, %c0_i32_0 : i32, i32
  }
  func.func @transform_3(%arg0: i32) -> (i32, i32) {
    %c0_i32 = arith.constant 0 : i32
    %c0_i32_0 = arith.constant 0 : i32
    %c0_i32_1 = arith.constant 0 : i32
    return %c0_i32, %c0_i32_0 : i32, i32
  }
  func.func @transform_4(%arg0: i32) -> (i32, i32) {
    %c0_i32 = arith.constant 0 : i32
    %c0_i32_0 = arith.constant 0 : i32
    %c0_i32_1 = arith.constant 0 : i32
    return %c0_i32, %c0_i32_0 : i32, i32
  }
  func.func @transform_5(%arg0: i32) -> (i32, i32) {
    %c0_i32 = arith.constant 0 : i32
    %c0_i32_0 = arith.constant 0 : i32
    %c0_i32_1 = arith.constant 0 : i32
    return %c0_i32, %c0_i32_0 : i32, i32
  }
  func.func @transform_6(%arg0: i32) -> (i32, i32, i32) {
    %c0_i32 = arith.constant 0 : i32
    %c0_i32_0 = arith.constant 0 : i32
    %c0_i32_1 = arith.constant 0 : i32
    %c0_i32_2 = arith.constant 0 : i32
    return %c0_i32, %c0_i32_0, %c0_i32_1 : i32, i32, i32
  }
  func.func @transform_7(%arg0: i32) -> (i32, i32) {
    %c0_i32 = arith.constant 0 : i32
    %c0_i32_0 = arith.constant 0 : i32
    %c0_i32_1 = arith.constant 0 : i32
    return %c0_i32, %c0_i32_0 : i32, i32
  }
  func.func @transform_8(%arg0: i32) -> (i32, i32) {
    %c0_i32 = arith.constant 0 : i32
    %c0_i32_0 = arith.constant 0 : i32
    %c0_i32_1 = arith.constant 0 : i32
    return %c0_i32, %c0_i32_0 : i32, i32
  }
  func.func @transform_9(%arg0: i32) -> (i32, i32) {
    %c0_i32 = arith.constant 0 : i32
    %c0_i32_0 = arith.constant 0 : i32
    %c0_i32_1 = arith.constant 0 : i32
    return %c0_i32, %c0_i32_0 : i32, i32
  }
  func.func @transform_10(%arg0: i32) -> (i32, i32) {
    %c0_i32 = arith.constant 0 : i32
    %c0_i32_0 = arith.constant 0 : i32
    %c0_i32_1 = arith.constant 0 : i32
    return %c0_i32, %c0_i32_0 : i32, i32
  }
}

</mosaic_0001>

<bundles_post_ra>
// kernel: hypergraph_gcn_v2_forward.1
= control target key start
LH: loop header
LB: loop body
LE: loop exit
PB: predicated region body
PF: predicated region fallthrough
CT: control target
= control target key end

     0   :  { %vm44_vm0 = vcmask 130048   ;;  %v1446_v4 = vmov 0.0   ;;  %vm1447_vm1 = vmmov 0   ;;  %vm126_vm2 = vcmask 64512   ;;  %s1749_s2 = inlined_call_operand.vmem [shape: f32[16,32], index: 2, kind: input, shape index: {}]   ;;  %s1750_s0 = inlined_call_operand.vmem [shape: f32[16,16], index: 0, kind: input, shape index: {}]   ;;  %s1751_s1 = inlined_call_operand.vmem [shape: f32[2,8,8], index: 1, kind: input, shape index: {}]   ;;  %s1752_s4 = inlined_call_operand.vmem [shape: f32[32,32], index: 4, kind: input, shape index: {}]   ;;  %s1753_s3 = inlined_call_operand.vmem [shape: f32[1,32], index: 3, kind: input, shape index: {}]   ;;  %s1754_s6 = inlined_call_operand.vmem [shape: f32[8,32,32], index: 6, kind: input, shape index: {}]   ;;  %s1755_s5 = inlined_call_operand.vmem [shape: f32[1,32], index: 5, kind: input, shape index: {}]   ;;  %s1756_s9 = inlined_call_operand.<no memory space> [shape: f32[1,1], index: 9, kind: input, shape index: {}]   ;;  %s1757_s7 = inlined_call_operand.vmem [shape: f32[1,32], index: 7, kind: input, shape index: {}]   ;;  %s1758_s8 = inlined_call_operand.vmem [shape: f32[1,32], index: 8, kind: input, shape index: {}]   ;;  %s1759_s10 = inlined_call_operand.vmem [shape: f32[2,1], index: 10, kind: output, shape index: {}]  }
   0x1   :  { %v42_v0 = vld [vmem:[%s1749_s2 + $0x8] sm:$0xff]  ;;  %v41_v1 = vld [vmem:[%s1749_s2] sm:$0xff]  ;;  %1325 = vmatprep.subr.mxu1 %v1446_v4  ;;  %1327 = vmatprep.mubr.msk.f32.mxu1 %vm1447_vm1, %v1446_v4  ;;  %v290_v9 = vld [vmem:[%s1752_s4 + $0x18] sm:$0xff]  ;;  %vm292_vm4 = vcmask 261120   ;;  %vm540_vm8 = vcmask 1041409   ;;  %vm1193_vm10 = vcmask 254976  }
   0x2   :  { %v37_v2 = vld [vmem:[%s1750_s0] sm:$0xff]  ;;  %1318 = vmatprep.subr.mxu0 %v42_v0  ;;  %v38_v3 = vld [vmem:[%s1750_s0 + $0x8] sm:$0xff]  ;;  %v289_v10 = vld [vmem:[%s1752_s4 + $0x10] sm:$0xff]  ;;  %vm1205_vm11 = vcmask 1024  }
   0x3   :  { %1322 = vmatprep.mubr.msk.f32.mxu0 %vm44_vm0, %v37_v2  ;;  %1319 = vmatpush3.msra.mxu0 %v42_v0  ;;  %v39_v6 = vld [vmem:[%s1751_s1] sm:$0xff]  ;;  %v40_v8 = vld [vmem:[%s1751_s1 + $0x8] sm:$0xff]  ;;  %v1224_v26 = vld [vmem:[%s1754_s6 + $0x38] sm:$0xff] }
   0x4   :  { %1320 = vmatprep.subr.mxu0 %v41_v1  ;;  %v288_v11 = vld [vmem:[%s1752_s4 + $0x8] sm:$0xff]  ;;  %v287_v12 = vld [vmem:[%s1752_s4] sm:$0xff]  ;;  %v1223_v27 = vld [vmem:[%s1754_s6 + $0x30] sm:$0xff] }
   0x5   :  { %1321 = vmatpush3.msra.mxu0 %v41_v1  ;;  %v1215_v13 = vld [vmem:[%s1753_s3] ss:$0 sm:$0xff]  ;;  %v531_v28 = vld [vmem:[%s1754_s6 + $0x18] sm:$0xff]  ;;  %v1222_v29 = vld [vmem:[%s1754_s6 + $0x28] sm:$0xff] }
   0x6   :  { %1323 = vmatmul.mubr.msk.f32.vlgmr.msra.gmra.mxu0 %vm44_vm0, %v38_v3  ;;  %1335 = vmatprep.subr.mxu0 %v290_v9  ;;  %v530_v30 = vld [vmem:[%s1754_s6 + $0x10] sm:$0xff]  ;;  %v1221_v31 = vld [vmem:[%s1754_s6 + $0x20] sm:$0xff]  ;;  %v529_v32 = vld [vmem:[%s1754_s6 + $0x8] sm:$0xff] }
   0x7   :  { %1336 = vmatpush3.msra.mxu0 %v290_v9  ;;  %v528_v33 = vld [vmem:[%s1754_s6] sm:$0xff]  ;;  %v1230_v46 = vld [vmem:[%s1754_s6 + $0x58] sm:$0xff]  ;;  %v1229_v49 = vld [vmem:[%s1754_s6 + $0x50] sm:$0xff] }
   0x8   :  { %1337 = vmatprep.subr.mxu0 %v289_v10  ;;  %v1220_v34 = vld [vmem:[%s1755_s5] ss:$0 sm:$0xff]  ;;  %v1235_v50 = vld [vmem:[%s1754_s6 + $0x78] sm:$0xff]  ;;  %v1228_v52 = vld [vmem:[%s1754_s6 + $0x48] sm:$0xff] }
   0x9   :  { %1338 = vmatpush3.msra.mxu0 %v289_v10  ;;  %v1234_v53 = vld [vmem:[%s1754_s6 + $0x70] sm:$0xff]  ;;  %v1227_v55 = vld [vmem:[%s1754_s6 + $0x40] sm:$0xff]  ;;  %v1233_v56 = vld [vmem:[%s1754_s6 + $0x68] sm:$0xff] }
   0xa   :  { %1339 = vmatprep.subr.mxu0 %v288_v11  ;;  %v1232_v58 = vld [vmem:[%s1754_s6 + $0x60] sm:$0xff]  ;;  %v1240_v61 = vld [vmem:[%s1754_s6 + $0x98] sm:$0xff]  ;;  %v1239_v63 = vld [vmem:[%s1754_s6 + $0x90] sm:$0xff] }
   0xb   :  { %1340 = vmatpush3.msra.mxu0 %v288_v11  ;;  %v1245_v1 = vld [vmem:[%s1754_s6 + $0xb8] sm:$0xff]  ;;  %v1238_v2 = vld [vmem:[%s1754_s6 + $0x88] sm:$0xff]  ;;  %v1244_v3 = vld [vmem:[%s1754_s6 + $0xb0] sm:$0xff] }
   0xc   :  { %1341 = vmatprep.subr.mxu0 %v287_v12  ;;  %v1242_v9 = vld [vmem:[%s1754_s6 + $0xa0] sm:$0xff] }
   0xd   :  { %1342 = vmatpush3.msra.mxu0 %v287_v12  ;;  %v1250_v12 = vld [vmem:[%s1754_s6 + $0xd8] sm:$0xff] }
   0xe   :  { %1356 = vmatprep.subr.mxu0 %v1446_v4 }
  0xc6   :  { %v1324_v5 = vpop.f32.mrf.mxu0 }
  0xc8   :  { %v117_v7 = vpop.f32.mrf.mxu0 }
  0xc9   :  { %1326 = vmatpush3.msra.mxu1 %v117_v7  ;;  %v1243_v7 = vld [vmem:[%s1754_s6 + $0xa8] sm:$0xff] }
  0xca   :  { %1328 = vmatmul.mubr.msk.f32.vlgmr.msra.gmra.mxu1 %vm126_vm2, %v39_v6  ;;  %1330 = vmatprep.subr.mxu1 %v1446_v4 }
  0xcb   :  { %1331 = vmatpush3.msra.mxu1 %v1324_v5  ;;  %1332 = vmatprep.mubr.msk.f32.mxu1 %vm1447_vm1, %v1446_v4  ;;  %v1237_v5 = vld [vmem:[%s1754_s6 + $0x80] sm:$0xff] }
  0xcc   :  { %1346 = vmatprep.subr.mxu1 %v1446_v4 }
  0xce   :  { %1333 = vmatmul.mubr.msk.f32.vlgmr.msra.gmra.mxu1 %vm126_vm2, %v40_v8 }
  0xcf   :  { %1348 = vmatprep.mubr.msk.f32.mxu1 %vm1447_vm1, %v1446_v4 }
 0x18a   :  { %v196_v14 = vpop.f32.mrf.mxu1 }
 0x18b   :  { %v279_v15 = vadd.f32 %v1215_v13, %v196_v14  ;;  %v1249_v14 = vld [vmem:[%s1754_s6 + $0xd0] sm:$0xff] }
 0x18c   :  { %v1329_v16 = vpop.f32.mrf.mxu1 }
 0x18d   :  { %vm281_vm3 = vcmp.gt.f32.partialorder %v279_v15, 0.0  ;;  %v283_v17 = vmul.f32 0.01, %v279_v15  ;;  %v1255_v16 = vld [vmem:[%s1754_s6 + $0xf8] sm:$0xff] }
 0x18e   :  { %v269_v18 = vpop.f32.mrf.mxu1 }
 0x18f   :  { %v280_v19 = vadd.f32 %v1215_v13, %v269_v18  ;;  %v285_v20 = vsel %vm281_vm3, %v279_v15, %v283_v17  ;;  %v1248_v17 = vld [vmem:[%s1754_s6 + $0xc8] sm:$0xff]  ;;  %v1254_v18 = vld [vmem:[%s1754_s6 + $0xf0] sm:$0xff] }
 0x190   :  { %v1334_v21 = vpop.f32.mrf.mxu1  ;;  %1343 = vmatprep.mubr.msk.f32.mxu0 %vm292_vm4, %v285_v20 }
 0x191   :  { %vm282_vm5 = vcmp.gt.f32.partialorder %v280_v19, 0.0  ;;  %v284_v22 = vmul.f32 0.01, %v280_v19  ;;  %v1253_v21 = vld [vmem:[%s1754_s6 + $0xe8] sm:$0xff] }
 0x193   :  { %v286_v23 = vsel %vm282_vm5, %v280_v19, %v284_v22  ;;  %v1247_v19 = vld [vmem:[%s1754_s6 + $0xc0] sm:$0xff] }
 0x194   :  { %1344 = vmatmul.mubr.msk.f32.vlgmr.msra.gmra.mxu0 %vm292_vm4, %v286_v23 }
 0x195   :  { %1364 = vmatprep.mubr.msk.f32.mxu0 %vm1447_vm1, %v1446_v4  ;;  %1357 = vmatpush3.msra.mxu0 %v1224_v26 }
 0x196   :  { %1358 = vmatprep.subr.mxu0 %v1446_v4 }
 0x197   :  { %1359 = vmatpush3.msra.mxu0 %v1223_v27 }
 0x198   :  { %1360 = vmatprep.subr.mxu0 %v1446_v4 }
 0x199   :  { %1361 = vmatpush3.msra.mxu0 %v1222_v29 }
 0x19a   :  { %1362 = vmatprep.subr.mxu0 %v1446_v4 }
 0x19b   :  { %1363 = vmatpush3.msra.mxu0 %v1221_v31 }
 0x19c   :  { %1378 = vmatprep.subr.mxu0 %v1446_v4 }
 0x254   :  { %v1345_v24 = vpop.f32.mrf.mxu0 }
 0x256   :  { %v365_v25 = vpop.f32.mrf.mxu0 }
 0x257   :  { %1347 = vmatpush3.msra.mxu1 %v365_v25 }
 0x258   :  { %1349 = vmatmul.mubr.msk.f32.vlgmr.msra.gmra.mxu1 %vm126_vm2, %v39_v6  ;;  %1351 = vmatprep.subr.mxu1 %v1446_v4 }
 0x259   :  { %1352 = vmatpush3.msra.mxu1 %v1345_v24  ;;  %1353 = vmatprep.mubr.msk.f32.mxu1 %vm1447_vm1, %v1446_v4  ;;  %v1252_v24 = vld [vmem:[%s1754_s6 + $0xe0] sm:$0xff] }
 0x25a   :  { %1367 = vmatprep.subr.mxu1 %v1446_v4 }
 0x25c   :  { %1354 = vmatmul.mubr.msk.f32.vlgmr.msra.gmra.mxu1 %vm126_vm2, %v40_v8 }
 0x25d   :  { %1375 = vmatprep.mubr.msk.f32.mxu1 %vm1447_vm1, %v1446_v4  ;;  %1368 = vmatpush3.msra.mxu1 %v531_v28  ;;  %v15_v28 = vstv %s1756_s9 }
 0x25e   :  { %1369 = vmatprep.subr.mxu1 %v1446_v4  ;;  %16 = vst [vmem:[#allocation2] sm:$0x1] %v15_v28 }
 0x25f   :  { %1370 = vmatpush3.msra.mxu1 %v530_v30 }
 0x260   :  { %1371 = vmatprep.subr.mxu1 %v1446_v4 }
 0x261   :  { %1372 = vmatpush3.msra.mxu1 %v529_v32 }
 0x262   :  { %1373 = vmatprep.subr.mxu1 %v1446_v4 }
 0x263   :  { %1374 = vmatpush3.msra.mxu1 %v528_v33 }
 0x264   :  { %1389 = vmatprep.subr.mxu1 %v1446_v4 }
 0x318   :  { %v440_v35 = vpop.f32.mrf.mxu1 }
 0x319   :  { %v520_v36 = vadd.f32 %v1220_v34, %v440_v35 }
 0x31a   :  { %v1350_v37 = vpop.f32.mrf.mxu1 }
 0x31b   :  { %vm522_vm6 = vcmp.gt.f32.partialorder %v520_v36, 0.0  ;;  %v524_v38 = vmul.f32 0.01, %v520_v36 }
 0x31c   :  { %v510_v39 = vpop.f32.mrf.mxu1 }
 0x31d   :  { %v1595_v40 = vsel %vm522_vm6, %v520_v36, %v524_v38  ;;  %v521_v41 = vadd.f32 %v1220_v34, %v510_v39 }
 0x31e   :  { %v1355_v42 = vpop.f32.mrf.mxu1  ;;  %v539_v44 = vrot.slane %v1595_v40, 1  ;;  %v693_v57 = vrot.slane %v1595_v40, 2  ;;  %v774_v62 = vrot.slane %v1595_v40, 3  ;;  %v855_v8 = vrot.slane %v1595_v40, 4 }
 0x31f   :  { %vm523_vm7 = vcmp.gt.f32.partialorder %v521_v41, 0.0  ;;  %v525_v43 = vmul.f32 0.01, %v521_v41  ;;  %v936_v13 = vrot.slane %v1595_v40, 5  ;;  %v1017_v22 = vrot.slane %v1595_v40, 6 }
 0x320   :  { %v1098_v26 = vrot.slane %v1595_v40, 7 }
 0x321   :  { %v1598_v45 = vsel %vm523_vm7, %v521_v41, %v525_v43 }
 0x322   :  { %v541_v47 = vsel %vm540_vm8, %v1598_v45, %v539_v44  ;;  %v614_v48 = vrot.slane %v1598_v45, 7  ;;  %v694_v54 = vrot.slane %v1598_v45, 1  ;;  %v775_v59 = vrot.slane %v1598_v45, 2 }
 0x323   :  { %1365 = vmatmul.mubr.msk.f32.vlgmr.msra.gmra.mxu0 %vm292_vm4, %v541_v47  ;;  %v856_v6 = vrot.slane %v1598_v45, 3  ;;  %v937_v10 = vrot.slane %v1598_v45, 4  ;;  %v1018_v20 = vrot.slane %v1598_v45, 5  ;;  %v1099_v23 = vrot.slane %v1598_v45, 6 }
 0x324   :  { %1379 = vmatpush3.msra.mxu0 %v1230_v46  ;;  %v615_v51 = vsel %vm540_vm8, %v614_v48, %v1595_v40  ;;  %1386 = vmatprep.mubr.msk.f32.mxu0 %vm1447_vm1, %v1446_v4  ;;  %v695_v60 = vsel %vm540_vm8, %v694_v54, %v693_v57  ;;  %v776_v0 = vsel %vm540_vm8, %v775_v59, %v774_v62  ;;  %v1258_v54 = vld [vmem:[%s1758_s8] ss:$0 sm:$0xff] }
 0x325   :  { %1380 = vmatprep.subr.mxu0 %v1446_v4  ;;  %1376 = vmatmul.mubr.msk.f32.vlgmr.msra.gmra.mxu1 %vm292_vm4, %v615_v51  ;;  %v857_v11 = vsel %vm540_vm8, %v856_v6, %v855_v8  ;;  %v938_v15 = vsel %vm540_vm8, %v937_v10, %v936_v13  ;;  %v1019_v25 = vsel %vm540_vm8, %v1018_v20, %v1017_v22 }
 0x326   :  { %1381 = vmatpush3.msra.mxu0 %v1229_v49  ;;  %1390 = vmatpush3.msra.mxu1 %v1235_v50  ;;  %v1100_v27 = vsel %vm540_vm8, %v1099_v23, %v1098_v26  ;;  %v1257_v49 = vld [vmem:[%s1757_s7] ss:$0 sm:$0xff] }
 0x327   :  { %1382 = vmatprep.subr.mxu0 %v1446_v4  ;;  %1391 = vmatprep.subr.mxu1 %v1446_v4 }
 0x328   :  { %1383 = vmatpush3.msra.mxu0 %v1228_v52  ;;  %1392 = vmatpush3.msra.mxu1 %v1234_v53 }
 0x329   :  { %1384 = vmatprep.subr.mxu0 %v1446_v4  ;;  %1393 = vmatprep.subr.mxu1 %v1446_v4 }
 0x32a   :  { %1385 = vmatpush3.msra.mxu0 %v1227_v55  ;;  %1394 = vmatpush3.msra.mxu1 %v1233_v56 }
 0x32b   :  { %1387 = vmatmul.mubr.msk.f32.vlgmr.msra.gmra.mxu0 %vm292_vm4, %v695_v60  ;;  %1395 = vmatprep.subr.mxu1 %v1446_v4 }
 0x32c   :  { %1400 = vmatprep.subr.mxu0 %v1446_v4  ;;  %1396 = vmatpush3.msra.mxu1 %v1232_v58  ;;  %v1259_v58 = vld [vmem:[#allocation2] ss:$0 sm:$0xff] }
 0x32d   :  { %1397 = vmatprep.mubr.msk.f32.mxu1 %vm1447_vm1, %v1446_v4  ;;  %1401 = vmatpush3.msra.mxu0 %v1240_v61 }
 0x32e   :  { %1398 = vmatmul.mubr.msk.f32.vlgmr.msra.gmra.mxu1 %vm292_vm4, %v776_v0  ;;  %1402 = vmatprep.subr.mxu0 %v1446_v4 }
 0x32f   :  { %1411 = vmatprep.subr.mxu1 %v1446_v4  ;;  %1403 = vmatpush3.msra.mxu0 %v1239_v63 }
 0x330   :  { %1412 = vmatpush3.msra.mxu1 %v1245_v1  ;;  %1404 = vmatprep.subr.mxu0 %v1446_v4 }
 0x331   :  { %1413 = vmatprep.subr.mxu1 %v1446_v4  ;;  %1405 = vmatpush3.msra.mxu0 %v1238_v2 }
 0x332   :  { %1414 = vmatpush3.msra.mxu1 %v1244_v3  ;;  %1406 = vmatprep.subr.mxu0 %v1446_v4 }
 0x333   :  { %1415 = vmatprep.subr.mxu1 %v1446_v4  ;;  %1407 = vmatpush3.msra.mxu0 %v1237_v5 }
 0x334   :  { %1408 = vmatprep.mubr.msk.f32.mxu0 %vm1447_vm1, %v1446_v4  ;;  %1416 = vmatpush3.msra.mxu1 %v1243_v7 }
 0x335   :  { %1409 = vmatmul.mubr.msk.f32.vlgmr.msra.gmra.mxu0 %vm292_vm4, %v857_v11  ;;  %1417 = vmatprep.subr.mxu1 %v1446_v4 }
 0x336   :  { %1422 = vmatprep.subr.mxu0 %v1446_v4  ;;  %1418 = vmatpush3.msra.mxu1 %v1242_v9 }
 0x337   :  { %1419 = vmatprep.mubr.msk.f32.mxu1 %vm1447_vm1, %v1446_v4  ;;  %1423 = vmatpush3.msra.mxu0 %v1250_v12 }
 0x338   :  { %1420 = vmatmul.mubr.msk.f32.vlgmr.msra.gmra.mxu1 %vm292_vm4, %v938_v15  ;;  %1424 = vmatprep.subr.mxu0 %v1446_v4 }
 0x339   :  { %1433 = vmatprep.subr.mxu1 %v1446_v4  ;;  %1425 = vmatpush3.msra.mxu0 %v1249_v14 }
 0x33a   :  { %1434 = vmatpush3.msra.mxu1 %v1255_v16  ;;  %1426 = vmatprep.subr.mxu0 %v1446_v4 }
 0x33b   :  { %1435 = vmatprep.subr.mxu1 %v1446_v4  ;;  %1427 = vmatpush3.msra.mxu0 %v1248_v17 }
 0x33c   :  { %1436 = vmatpush3.msra.mxu1 %v1254_v18  ;;  %1428 = vmatprep.subr.mxu0 %v1446_v4 }
 0x33d   :  { %1437 = vmatprep.subr.mxu1 %v1446_v4  ;;  %1429 = vmatpush3.msra.mxu0 %v1247_v19 }
 0x33e   :  { %1430 = vmatprep.mubr.msk.f32.mxu0 %vm1447_vm1, %v1446_v4  ;;  %1438 = vmatpush3.msra.mxu1 %v1253_v21 }
 0x33f   :  { %1431 = vmatmul.mubr.msk.f32.vlgmr.msra.gmra.mxu0 %vm292_vm4, %v1019_v25  ;;  %1439 = vmatprep.subr.mxu1 %v1446_v4 }
 0x340   :  { %1440 = vmatpush3.msra.mxu1 %v1252_v24  ;;  %1441 = vmatprep.mubr.msk.f32.mxu1 %vm1447_vm1, %v1446_v4 }
 0x341   :  { %1442 = vmatmul.mubr.msk.f32.vlgmr.msra.gmra.mxu1 %vm292_vm4, %v1100_v27 }
 0x3e3   :  { %v610_v29 = vpop.f32.mrf.mxu0 }
 0x3e5   :  { %v1366_v30 = vpop.f32.mrf.mxu0  ;;  %v684_v31 = vpop.f32.mrf.mxu1 }
 0x3e6   :  { %v685_v37 = vadd.f32 %v684_v31, %v610_v29 }
 0x3e7   :  { %v1377_v32 = vpop.f32.mrf.mxu1 }
 0x3eb   :  { %v764_v33 = vpop.f32.mrf.mxu0 }
 0x3ec   :  { %v768_v38 = vadd.f32 %v764_v33, %v685_v37 }
 0x3ed   :  { %v1388_v34 = vpop.f32.mrf.mxu0 }
 0x3ee   :  { %v845_v35 = vpop.f32.mrf.mxu1 }
 0x3ef   :  { %v849_v40 = vadd.f32 %v845_v35, %v768_v38 }
 0x3f0   :  { %v1399_v36 = vpop.f32.mrf.mxu1 }
 0x3f5   :  { %v926_v4 = vpop.f32.mrf.mxu0 }
 0x3f6   :  { %v930_v42 = vadd.f32 %v926_v4, %v849_v40 }
 0x3f7   :  { %v1410_v39 = vpop.f32.mrf.mxu0 }
 0x3f8   :  { %v1007_v41 = vpop.f32.mrf.mxu1 }
 0x3f9   :  { %v1011_v44 = vadd.f32 %v1007_v41, %v930_v42 }
 0x3fa   :  { %v1421_v43 = vpop.f32.mrf.mxu1 }
 0x3ff   :  { %v1088_v45 = vpop.f32.mrf.mxu0 }
 0x400   :  { %v1092_v46 = vadd.f32 %v1088_v45, %v1011_v44 }
 0x401   :  { %v1432_v47 = vpop.f32.mrf.mxu0  ;;  %v1169_v48 = vpop.f32.mrf.mxu1 }
 0x402   :  { %v1173_v50 = vadd.f32 %v1169_v48, %v1092_v46 }
 0x403   :  { %v1443_v51 = vpop.f32.mrf.mxu1 }
 0x404   :  { %v1181_v52 = vadd.f32 %v1257_v49, %v1173_v50 }
 0x406   :  { %v1183_v53 = vmul.f32 0.01, %v1181_v52  ;;  %vm1182_vm9 = vcmp.gt.f32.partialorder %v1181_v52, 0.0 }
 0x408   :  { %v1184_v55 = vsel %vm1182_vm9, %v1181_v52, %v1183_v53 }
 0x409   :  { %v1192_v56 = vmul.f32 %v1258_v54, %v1184_v55 }
 0x40b   :  { %v1194_v57 = vsel %vm1193_vm10, %v1192_v56, 0.0 }
 0x40c   :  { %1195 = vadd.xlane.f32.xlu0 %v1194_v57 }
 0x495   :  { %v1196_v59 = vpop.xlane.xlu0 %1195 }
 0x496   :  { %v1204_v60 = vadd.f32 %v1259_v58, %v1196_v59 }
 0x498   :  { %1206 = vst.msk [vmem:[%s1759_s10] sm:$0x3] %vm1205_vm11, %v1204_v60 }

</bundles_post_ra>
